<compile_context>
chip_gen: v7x
topology: tpu7x:2x2x1
jax: 0.10.0
libtpu: 0.0.40
codegen_flags: <defaults>
</compile_context>

<pallas_src>
import functools

import jax
import jax.numpy as jnp
from jax.experimental import pallas as pl
from jax.experimental.pallas import tpu as pltpu


def _gat_kernel(h_ref, w1_ref, ln_ref, w2_ref, b2_ref, mask_ref, out_ref):
    # h_ref:   (block_b, N, F) f32
    # w1_ref:  (H, F, HID) bf16      ln_ref: (H, 3, HID) f32 = [b1; gamma; beta]
    # w2_ref:  (H, HID, D) bf16      b2_ref: (H, 1, D) f32
    # mask_ref:(N, N) bf16           out_ref: (block_b, N, H*D) f32
    block_b, nodes, feat = h_ref.shape
    num_heads = w1_ref.shape[0]
    out_dim = w2_ref.shape[-1]

    # Fold batch into the matmul M-dim; bf16 MXU operands, f32 accumulation.
    x = h_ref[...].reshape(block_b * nodes, feat).astype(jnp.bfloat16)

    # Hoisted out of the head loop: adjacency mask (exact 0/1 values) and its
    # broadcast -- JAX does not CSE broadcast_in_dim inside unrolled loops.
    mask_b = mask_ref[...].astype(jnp.float32)[None]          # (1, N, N)

    head_outs = []
    for hd in range(num_heads):                               # static unroll, H small
        ln = ln_ref[hd]                                       # (3, HID)

        # --- MLP: Linear -> LayerNorm -> ReLU -> Linear ---
        z1 = jnp.dot(x, w1_ref[hd], preferred_element_type=jnp.float32) + ln[0:1]
        mu = jnp.mean(z1, axis=-1, keepdims=True)
        var = jnp.mean(z1 * z1, axis=-1, keepdims=True) - mu * mu    # one-pass var
        var = jnp.maximum(var, 0.0)
        z1 = (z1 - mu) * jax.lax.rsqrt(var + 1e-5)
        z1 = z1 * ln[1:2] + ln[2:3]
        z1 = jnp.maximum(z1, 0.0)                                    # ReLU
        z = jnp.dot(z1.astype(jnp.bfloat16), w2_ref[hd],
                    preferred_element_type=jnp.float32) + b2_ref[hd]
        zb = z.reshape(block_b, nodes, out_dim).astype(jnp.bfloat16)

        # --- inner-product attention: (b,n,d) x (b,m,d) -> (b,n,m) ---
        # dot_general contraction on dim 2 of both operands: no explicit z.T.
        att = jax.lax.dot_general(zb, zb, (((2,), (2,)), ((0,), (0,))),
                                  preferred_element_type=jnp.float32)
        att = jnp.where(att > 0, att, 0.1 * att)              # LeakyReLU(0.1)
        att = att * mask_b                                    # adjacency mask

        # softmax over last axis -- masked (zero) logits DO contribute exp(0-m),
        # matching the PyTorch edge_attention_innerprod path exactly.
        m = jnp.max(att, axis=-1, keepdims=True)
        p = jnp.exp(att - m)
        att = p * pl.reciprocal(jnp.sum(p, axis=-1, keepdims=True), approx=True)

        # --- aggregate: (b,n,m) x (b,m,d) -> (b,n,d) ---
        agg = jax.lax.dot_general(att.astype(jnp.bfloat16), zb,
                                  (((2,), (1,)), ((0,), (0,))),
                                  preferred_element_type=jnp.float32)
        head_outs.append(agg)

    # merge='cat': single full-width (H*D lanes) store, no partial vst.
    out_ref[...] = jnp.concatenate(head_outs, axis=-1).astype(out_ref.dtype)


def _pick_block_b(bc, nodes, feat, num_heads, out_dim, hidden,
                  vmem_budget=8 << 20):
    """Largest divisor of bc whose per-step f32 working set (dominated by the
    (block_b, N, N) attention matrix) fits in a conservative VMEM budget,
    while preferring >= 2 grid steps (v7x has two TensorCores)."""
    per_b = 4 * (nodes * nodes                      # attention matrix
                 + nodes * feat                     # h tile
                 + nodes * (hidden + 2 * num_heads * out_dim))  # z1 / z / out
    cap = max(1, vmem_budget // max(per_b, 1))
    target = min(cap, max(1, bc // 2))
    for b in range(int(target), 0, -1):
        if bc % b == 0:
            return b
    return 1


def multi_head_gat(h, params, mask, *, block_b=None):
    """h: [bc, nodes, feat] f32. params: dict of stacked per-head weights.
    Returns [bc, nodes, num_heads * output_dim] (merge='cat')."""
    bc, nodes, feat = h.shape
    num_heads, _, hidden = params["w1"].shape
    out_dim = params["w2"].shape[-1]

    if block_b is None:
        block_b = _pick_block_b(bc, nodes, feat, num_heads, out_dim, hidden)
    assert bc % block_b == 0, "bc must be divisible by block_b"
    grid = (bc // block_b,)

    # Pack b1/gamma/beta into one array -> one DMA descriptor instead of three.
    ln_pack = jnp.concatenate(
        [params["b1"], params["gamma"], params["beta"]], axis=1)   # (H, 3, HID) f32
    # MXU operands cast once on the host (resident in VMEM across the grid).
    w1_bf16 = params["w1"].astype(jnp.bfloat16)
    w2_bf16 = params["w2"].astype(jnp.bfloat16)
    mask_bf16 = mask.astype(jnp.bfloat16)   # 0/1 exact; halves DMA/VMEM bytes

    return pl.pallas_call(
        _gat_kernel,
        out_shape=jax.ShapeDtypeStruct((bc, nodes, num_heads * out_dim),
                                       jnp.float32),
        grid_spec=pltpu.PrefetchScalarGridSpec(
            num_scalar_prefetch=0,
            grid=grid,
            in_specs=[
                pl.BlockSpec((block_b, nodes, feat), lambda b: (b, 0, 0)),       # h
                pl.BlockSpec((num_heads, feat, hidden), lambda b: (0, 0, 0)),    # w1 (resident)
                pl.BlockSpec((num_heads, 3, hidden), lambda b: (0, 0, 0)),       # b1/gamma/beta
                pl.BlockSpec((num_heads, hidden, out_dim), lambda b: (0, 0, 0)), # w2 (resident)
                pl.BlockSpec((num_heads, 1, out_dim), lambda b: (0, 0, 0)),      # b2
                pl.BlockSpec((nodes, nodes), lambda b: (0, 0)),                  # mask (resident)
            ],
            out_specs=pl.BlockSpec((block_b, nodes, num_heads * out_dim),
                                   lambda b: (b, 0, 0)),
        ),
        compiler_params=pltpu.CompilerParams(
            dimension_semantics=("parallel",)),
    )(h, w1_bf16, ln_pack, w2_bf16, params["b2"], mask_bf16)


def _reference(h, params, mask):
    """Pure-JAX f32 reference mirroring the PyTorch forward, for verification."""
    bc, nodes, feat = h.shape
    num_heads = params["w1"].shape[0]
    outs = []
    for hd in range(num_heads):
        x = h.reshape(bc * nodes, feat)
        z1 = x @ params["w1"][hd] + params["b1"][hd, 0]
        mu = jnp.mean(z1, axis=-1, keepdims=True)
        var = jnp.mean((z1 - mu) ** 2, axis=-1, keepdims=True)
        z1 = (z1 - mu) / jnp.sqrt(var + 1e-5) * params["gamma"][hd, 0] + params["beta"][hd, 0]
        z1 = jnp.maximum(z1, 0.0)
        z = (z1 @ params["w2"][hd] + params["b2"][hd, 0]).reshape(bc, nodes, -1)
        att = jnp.einsum("bnd,bmd->bnm", z, z)
        att = jnp.where(att > 0, att, 0.1 * att) * mask[None]
        att = jax.nn.softmax(att, axis=2)
        outs.append(jnp.einsum("bnm,bmd->bnd", att, z))
    return jnp.concatenate(outs, axis=2)


if __name__ == "__main__":
    # Small, deterministic configuration.
    bc, nodes, feat = 2, 16, 16
    hidden, out_dim, num_heads = 32, 8, 2

    key = jax.random.PRNGKey(0)
    k_h, k_w1, k_b1, k_w2, k_b2 = jax.random.split(key, 5)

    h = jax.random.normal(k_h, (bc, nodes, feat), dtype=jnp.float32)

    params = {
        "w1":    0.1 * jax.random.normal(k_w1, (num_heads, feat, hidden), dtype=jnp.float32),
        "b1":    0.1 * jax.random.normal(k_b1, (num_heads, 1, hidden), dtype=jnp.float32),
        "gamma": jnp.ones((num_heads, 1, hidden), dtype=jnp.float32),
        "beta":  jnp.zeros((num_heads, 1, hidden), dtype=jnp.float32),
        "w2":    0.1 * jax.random.normal(k_w2, (num_heads, hidden, out_dim), dtype=jnp.float32),
        "b2":    0.1 * jax.random.normal(k_b2, (num_heads, 1, out_dim), dtype=jnp.float32),
    }

    # Synthetic adjacency (deterministic): self-loops + ring neighbors.
    rows = jnp.concatenate([jnp.arange(nodes)] * 3)
    cols = jnp.concatenate([jnp.arange(nodes),
                            (jnp.arange(nodes) + 1) % nodes,
                            (jnp.arange(nodes) - 1) % nodes])
    mask = jnp.zeros((nodes, nodes), dtype=jnp.float32).at[rows, cols].set(1.0)

    out = jax.block_until_ready(
        jax.jit(functools.partial(multi_head_gat))(h, params, mask))

    ref = _reference(h, params, mask)
    assert out.shape == (bc, nodes, num_heads * out_dim)
    # Tolerance loosened for bf16 MXU operands (accumulation stays f32).
    assert jnp.allclose(out, ref, atol=2e-2, rtol=2e-2), "mismatch vs reference"

    print("KERNEL_OK")
</pallas_src>

<mosaic_0001>
module attributes {stable_mosaic.version = 11 : i64} {
  func.func @_gat_kernel(%arg0: i32, %arg1: memref<1x16x16xf32, #tpu.memory_space<vmem>>, %arg2: memref<2x16x32xbf16, #tpu.memory_space<vmem>>, %arg3: memref<2x3x32xf32, #tpu.memory_space<vmem>>, %arg4: memref<2x32x8xbf16, #tpu.memory_space<vmem>>, %arg5: memref<2x1x8xf32, #tpu.memory_space<vmem>>, %arg6: memref<16x16xbf16, #tpu.memory_space<vmem>>, %arg7: memref<1x16x16xf32, #tpu.memory_space<vmem>>) attributes {dimension_semantics = [#tpu.dimension_semantics<parallel>], iteration_bounds = array<i64: 2>, scalar_prefetch = 0 : i64, scratch_operands = 0 : i64, tpu.core_type = #tpu.core_type<tc>, window_params = [{transform_indices = @transform_0, window_bounds = array<i64: 1, 16, 16>}, {pipeline_mode = #tpu.pipeline_mode<synchronous>, transform_indices = @transform_1, window_bounds = array<i64: 2, 16, 32>}, {pipeline_mode = #tpu.pipeline_mode<synchronous>, transform_indices = @transform_2, window_bounds = array<i64: 2, 3, 32>}, {pipeline_mode = #tpu.pipeline_mode<synchronous>, transform_indices = @transform_3, window_bounds = array<i64: 2, 32, 8>}, {pipeline_mode = #tpu.pipeline_mode<synchronous>, transform_indices = @transform_4, window_bounds = array<i64: 2, 1, 8>}, {pipeline_mode = #tpu.pipeline_mode<synchronous>, transform_indices = @transform_5, window_bounds = array<i64: 16, 16>}, {transform_indices = @transform_6, window_bounds = array<i64: 1, 16, 16>}]} {
    %c0 = arith.constant 0 : index
    %c0_0 = arith.constant 0 : index
    %c0_1 = arith.constant 0 : index
    %0 = vector.load %arg1[%c0, %c0_0, %c0_1] : memref<1x16x16xf32, #tpu.memory_space<vmem>>, vector<1x16x16xf32>
    %1 = vector.shape_cast %0 : vector<1x16x16xf32> to vector<16x16xf32>
    %2 = arith.truncf %1 : vector<16x16xf32> to vector<16x16xbf16>
    %c0_2 = arith.constant 0 : index
    %c0_3 = arith.constant 0 : index
    %3 = vector.load %arg6[%c0_2, %c0_3] : memref<16x16xbf16, #tpu.memory_space<vmem>>, vector<16x16xbf16>
    %4 = arith.extf %3 : vector<16x16xbf16> to vector<16x16xf32>
    %5 = vector.shape_cast %4 : vector<16x16xf32> to vector<1x16x16xf32>
    %c0_4 = arith.constant 0 : index
    %c0_5 = arith.constant 0 : index
    %c0_6 = arith.constant 0 : index
    %6 = vector.load %arg3[%c0_4, %c0_5, %c0_6] : memref<2x3x32xf32, #tpu.memory_space<vmem>>, vector<1x3x32xf32>
    %7 = vector.shape_cast %6 : vector<1x3x32xf32> to vector<3x32xf32>
    %c0_7 = arith.constant 0 : index
    %c0_8 = arith.constant 0 : index
    %c0_9 = arith.constant 0 : index
    %8 = vector.load %arg2[%c0_7, %c0_8, %c0_9] : memref<2x16x32xbf16, #tpu.memory_space<vmem>>, vector<1x16x32xbf16>
    %9 = vector.shape_cast %8 : vector<1x16x32xbf16> to vector<16x32xbf16>
    %cst = arith.constant dense<0.000000e+00> : vector<16x32xf32>
    %10 = tpu.matmul %2, %9, %cst {dimension_numbers = #tpu.dot_dimension_numbers<[1], [0], [0], [1], [0, 0, 1, 1], [], []>} : vector<16x16xbf16>, vector<16x32xbf16>, vector<16x32xf32> -> vector<16x32xf32>
    %11 = vector.extract_strided_slice %7 {offsets = [0, 0], sizes = [1, 32], strides = [1, 1]} : vector<3x32xf32> to vector<1x32xf32>
    %12 = vector.broadcast %11 : vector<1x32xf32> to vector<16x32xf32>
    %13 = arith.addf %10, %12 : vector<16x32xf32>
    %cst_10 = arith.constant dense<0.000000e+00> : vector<16xf32>
    %14 = vector.multi_reduction <add>, %13, %cst_10 [1] : vector<16x32xf32> to vector<16xf32>
    %15 = vector.shape_cast %14 : vector<16xf32> to vector<16x1xf32>
    %cst_11 = arith.constant 3.200000e+01 : f32
    %16 = vector.broadcast %cst_11 : f32 to vector<16x1xf32>
    %17 = arith.divf %15, %16 : vector<16x1xf32>
    %18 = arith.mulf %13, %13 : vector<16x32xf32>
    %cst_12 = arith.constant dense<0.000000e+00> : vector<16xf32>
    %19 = vector.multi_reduction <add>, %18, %cst_12 [1] : vector<16x32xf32> to vector<16xf32>
    %20 = vector.shape_cast %19 : vector<16xf32> to vector<16x1xf32>
    %cst_13 = arith.constant 3.200000e+01 : f32
    %21 = vector.broadcast %cst_13 : f32 to vector<16x1xf32>
    %22 = arith.divf %20, %21 : vector<16x1xf32>
    %23 = arith.mulf %17, %17 : vector<16x1xf32>
    %24 = arith.subf %22, %23 : vector<16x1xf32>
    %cst_14 = arith.constant 0.000000e+00 : f32
    %25 = vector.broadcast %cst_14 : f32 to vector<16x1xf32>
    %26 = arith.maximumf %24, %25 : vector<16x1xf32>
    %27 = vector.broadcast %17 : vector<16x1xf32> to vector<16x32xf32>
    %28 = arith.subf %13, %27 : vector<16x32xf32>
    %cst_15 = arith.constant 9.99999974E-6 : f32
    %29 = vector.broadcast %cst_15 : f32 to vector<16x1xf32>
    %30 = arith.addf %26, %29 : vector<16x1xf32>
    %31 = math.rsqrt %30 : vector<16x1xf32>
    %32 = vector.broadcast %31 : vector<16x1xf32> to vector<16x32xf32>
    %33 = arith.mulf %28, %32 : vector<16x32xf32>
    %34 = vector.extract_strided_slice %7 {offsets = [1, 0], sizes = [1, 32], strides = [1, 1]} : vector<3x32xf32> to vector<1x32xf32>
    %35 = vector.broadcast %34 : vector<1x32xf32> to vector<16x32xf32>
    %36 = arith.mulf %33, %35 : vector<16x32xf32>
    %37 = vector.extract_strided_slice %7 {offsets = [2, 0], sizes = [1, 32], strides = [1, 1]} : vector<3x32xf32> to vector<1x32xf32>
    %38 = vector.broadcast %37 : vector<1x32xf32> to vector<16x32xf32>
    %39 = arith.addf %36, %38 : vector<16x32xf32>
    %cst_16 = arith.constant 0.000000e+00 : f32
    %40 = vector.broadcast %cst_16 : f32 to vector<16x32xf32>
    %41 = arith.maximumf %39, %40 : vector<16x32xf32>
    %42 = arith.truncf %41 : vector<16x32xf32> to vector<16x32xbf16>
    %c0_17 = arith.constant 0 : index
    %c0_18 = arith.constant 0 : index
    %c0_19 = arith.constant 0 : index
    %43 = vector.load %arg4[%c0_17, %c0_18, %c0_19] : memref<2x32x8xbf16, #tpu.memory_space<vmem>>, vector<1x32x8xbf16>
    %44 = vector.shape_cast %43 : vector<1x32x8xbf16> to vector<32x8xbf16>
    %cst_20 = arith.constant dense<0.000000e+00> : vector<16x8xf32>
    %45 = tpu.matmul %42, %44, %cst_20 {dimension_numbers = #tpu.dot_dimension_numbers<[1], [0], [0], [1], [0, 0, 1, 1], [], []>} : vector<16x32xbf16>, vector<32x8xbf16>, vector<16x8xf32> -> vector<16x8xf32>
    %c0_21 = arith.constant 0 : index
    %c0_22 = arith.constant 0 : index
    %c0_23 = arith.constant 0 : index
    %46 = vector.load %arg5[%c0_21, %c0_22, %c0_23] : memref<2x1x8xf32, #tpu.memory_space<vmem>>, vector<1x1x8xf32>
    %47 = vector.shape_cast %46 : vector<1x1x8xf32> to vector<1x8xf32>
    %48 = vector.broadcast %47 : vector<1x8xf32> to vector<16x8xf32>
    %49 = arith.addf %45, %48 : vector<16x8xf32>
    %50 = vector.shape_cast %49 : vector<16x8xf32> to vector<1x16x8xf32>
    %51 = arith.truncf %50 : vector<1x16x8xf32> to vector<1x16x8xbf16>
    %cst_24 = arith.constant dense<0.000000e+00> : vector<1x16x16xf32>
    %52 = tpu.matmul %51, %51, %cst_24 {dimension_numbers = #tpu.dot_dimension_numbers<[2], [2], [1], [1], [0, 0, 0, 1, 1, 1], [0], [0]>} : vector<1x16x8xbf16>, vector<1x16x8xbf16>, vector<1x16x16xf32> -> vector<1x16x16xf32>
    %cst_25 = arith.constant 0.000000e+00 : f32
    %53 = vector.broadcast %cst_25 : f32 to vector<1x16x16xf32>
    %54 = arith.cmpf ogt, %52, %53 : vector<1x16x16xf32>
    %cst_26 = arith.constant 1.000000e-01 : f32
    %55 = vector.broadcast %cst_26 : f32 to vector<1x16x16xf32>
    %56 = arith.mulf %55, %52 : vector<1x16x16xf32>
    %57 = arith.select %54, %52, %56 : vector<1x16x16xi1>, vector<1x16x16xf32>
    %58 = arith.mulf %57, %5 : vector<1x16x16xf32>
    %cst_27 = arith.constant dense<0xFF800000> : vector<1x16xf32>
    %59 = vector.multi_reduction <maximumf>, %58, %cst_27 [2] : vector<1x16x16xf32> to vector<1x16xf32>
    %60 = vector.shape_cast %59 : vector<1x16xf32> to vector<1x16x1xf32>
    %61 = vector.broadcast %60 : vector<1x16x1xf32> to vector<1x16x16xf32>
    %62 = arith.subf %58, %61 : vector<1x16x16xf32>
    %63 = math.exp %62 : vector<1x16x16xf32>
    %cst_28 = arith.constant dense<0.000000e+00> : vector<1x16xf32>
    %64 = vector.multi_reduction <add>, %63, %cst_28 [2] : vector<1x16x16xf32> to vector<1x16xf32>
    %65 = vector.shape_cast %64 : vector<1x16xf32> to vector<1x16x1xf32>
    %66 = tpu.reciprocal %65 {approx = true} : vector<1x16x1xf32> -> vector<1x16x1xf32>
    %67 = vector.broadcast %66 : vector<1x16x1xf32> to vector<1x16x16xf32>
    %68 = arith.mulf %63, %67 : vector<1x16x16xf32>
    %69 = arith.truncf %68 : vector<1x16x16xf32> to vector<1x16x16xbf16>
    %cst_29 = arith.constant dense<0.000000e+00> : vector<1x16x8xf32>
    %70 = tpu.matmul %69, %51, %cst_29 {dimension_numbers = #tpu.dot_dimension_numbers<[2], [1], [1], [2], [0, 0, 0, 1, 1, 2], [0], [0]>} : vector<1x16x16xbf16>, vector<1x16x8xbf16>, vector<1x16x8xf32> -> vector<1x16x8xf32>
    %c1 = arith.constant 1 : index
    %c0_30 = arith.constant 0 : index
    %c0_31 = arith.constant 0 : index
    %71 = vector.load %arg3[%c1, %c0_30, %c0_31] : memref<2x3x32xf32, #tpu.memory_space<vmem>>, vector<1x3x32xf32>
    %72 = vector.shape_cast %71 : vector<1x3x32xf32> to vector<3x32xf32>
    %c1_32 = arith.constant 1 : index
    %c0_33 = arith.constant 0 : index
    %c0_34 = arith.constant 0 : index
    %73 = vector.load %arg2[%c1_32, %c0_33, %c0_34] : memref<2x16x32xbf16, #tpu.memory_space<vmem>>, vector<1x16x32xbf16>
    %74 = vector.shape_cast %73 : vector<1x16x32xbf16> to vector<16x32xbf16>
    %cst_35 = arith.constant dense<0.000000e+00> : vector<16x32xf32>
    %75 = tpu.matmul %2, %74, %cst_35 {dimension_numbers = #tpu.dot_dimension_numbers<[1], [0], [0], [1], [0, 0, 1, 1], [], []>} : vector<16x16xbf16>, vector<16x32xbf16>, vector<16x32xf32> -> vector<16x32xf32>
    %76 = vector.extract_strided_slice %72 {offsets = [0, 0], sizes = [1, 32], strides = [1, 1]} : vector<3x32xf32> to vector<1x32xf32>
    %77 = vector.broadcast %76 : vector<1x32xf32> to vector<16x32xf32>
    %78 = arith.addf %75, %77 : vector<16x32xf32>
    %cst_36 = arith.constant dense<0.000000e+00> : vector<16xf32>
    %79 = vector.multi_reduction <add>, %78, %cst_36 [1] : vector<16x32xf32> to vector<16xf32>
    %80 = vector.shape_cast %79 : vector<16xf32> to vector<16x1xf32>
    %cst_37 = arith.constant 3.200000e+01 : f32
    %81 = vector.broadcast %cst_37 : f32 to vector<16x1xf32>
    %82 = arith.divf %80, %81 : vector<16x1xf32>
    %83 = arith.mulf %78, %78 : vector<16x32xf32>
    %cst_38 = arith.constant dense<0.000000e+00> : vector<16xf32>
    %84 = vector.multi_reduction <add>, %83, %cst_38 [1] : vector<16x32xf32> to vector<16xf32>
    %85 = vector.shape_cast %84 : vector<16xf32> to vector<16x1xf32>
    %cst_39 = arith.constant 3.200000e+01 : f32
    %86 = vector.broadcast %cst_39 : f32 to vector<16x1xf32>
    %87 = arith.divf %85, %86 : vector<16x1xf32>
    %88 = arith.mulf %82, %82 : vector<16x1xf32>
    %89 = arith.subf %87, %88 : vector<16x1xf32>
    %cst_40 = arith.constant 0.000000e+00 : f32
    %90 = vector.broadcast %cst_40 : f32 to vector<16x1xf32>
    %91 = arith.maximumf %89, %90 : vector<16x1xf32>
    %92 = vector.broadcast %82 : vector<16x1xf32> to vector<16x32xf32>
    %93 = arith.subf %78, %92 : vector<16x32xf32>
    %cst_41 = arith.constant 9.99999974E-6 : f32
    %94 = vector.broadcast %cst_41 : f32 to vector<16x1xf32>
    %95 = arith.addf %91, %94 : vector<16x1xf32>
    %96 = math.rsqrt %95 : vector<16x1xf32>
    %97 = vector.broadcast %96 : vector<16x1xf32> to vector<16x32xf32>
    %98 = arith.mulf %93, %97 : vector<16x32xf32>
    %99 = vector.extract_strided_slice %72 {offsets = [1, 0], sizes = [1, 32], strides = [1, 1]} : vector<3x32xf32> to vector<1x32xf32>
    %100 = vector.broadcast %99 : vector<1x32xf32> to vector<16x32xf32>
    %101 = arith.mulf %98, %100 : vector<16x32xf32>
    %102 = vector.extract_strided_slice %72 {offsets = [2, 0], sizes = [1, 32], strides = [1, 1]} : vector<3x32xf32> to vector<1x32xf32>
    %103 = vector.broadcast %102 : vector<1x32xf32> to vector<16x32xf32>
    %104 = arith.addf %101, %103 : vector<16x32xf32>
    %cst_42 = arith.constant 0.000000e+00 : f32
    %105 = vector.broadcast %cst_42 : f32 to vector<16x32xf32>
    %106 = arith.maximumf %104, %105 : vector<16x32xf32>
    %107 = arith.truncf %106 : vector<16x32xf32> to vector<16x32xbf16>
    %c1_43 = arith.constant 1 : index
    %c0_44 = arith.constant 0 : index
    %c0_45 = arith.constant 0 : index
    %108 = vector.load %arg4[%c1_43, %c0_44, %c0_45] : memref<2x32x8xbf16, #tpu.memory_space<vmem>>, vector<1x32x8xbf16>
    %109 = vector.shape_cast %108 : vector<1x32x8xbf16> to vector<32x8xbf16>
    %cst_46 = arith.constant dense<0.000000e+00> : vector<16x8xf32>
    %110 = tpu.matmul %107, %109, %cst_46 {dimension_numbers = #tpu.dot_dimension_numbers<[1], [0], [0], [1], [0, 0, 1, 1], [], []>} : vector<16x32xbf16>, vector<32x8xbf16>, vector<16x8xf32> -> vector<16x8xf32>
    %c1_47 = arith.constant 1 : index
    %c0_48 = arith.constant 0 : index
    %c0_49 = arith.constant 0 : index
    %111 = vector.load %arg5[%c1_47, %c0_48, %c0_49] : memref<2x1x8xf32, #tpu.memory_space<vmem>>, vector<1x1x8xf32>
    %112 = vector.shape_cast %111 : vector<1x1x8xf32> to vector<1x8xf32>
    %113 = vector.broadcast %112 : vector<1x8xf32> to vector<16x8xf32>
    %114 = arith.addf %110, %113 : vector<16x8xf32>
    %115 = vector.shape_cast %114 : vector<16x8xf32> to vector<1x16x8xf32>
    %116 = arith.truncf %115 : vector<1x16x8xf32> to vector<1x16x8xbf16>
    %cst_50 = arith.constant dense<0.000000e+00> : vector<1x16x16xf32>
    %117 = tpu.matmul %116, %116, %cst_50 {dimension_numbers = #tpu.dot_dimension_numbers<[2], [2], [1], [1], [0, 0, 0, 1, 1, 1], [0], [0]>} : vector<1x16x8xbf16>, vector<1x16x8xbf16>, vector<1x16x16xf32> -> vector<1x16x16xf32>
    %cst_51 = arith.constant 0.000000e+00 : f32
    %118 = vector.broadcast %cst_51 : f32 to vector<1x16x16xf32>
    %119 = arith.cmpf ogt, %117, %118 : vector<1x16x16xf32>
    %cst_52 = arith.constant 1.000000e-01 : f32
    %120 = vector.broadcast %cst_52 : f32 to vector<1x16x16xf32>
    %121 = arith.mulf %120, %117 : vector<1x16x16xf32>
    %122 = arith.select %119, %117, %121 : vector<1x16x16xi1>, vector<1x16x16xf32>
    %123 = arith.mulf %122, %5 : vector<1x16x16xf32>
    %cst_53 = arith.constant dense<0xFF800000> : vector<1x16xf32>
    %124 = vector.multi_reduction <maximumf>, %123, %cst_53 [2] : vector<1x16x16xf32> to vector<1x16xf32>
    %125 = vector.shape_cast %124 : vector<1x16xf32> to vector<1x16x1xf32>
    %126 = vector.broadcast %125 : vector<1x16x1xf32> to vector<1x16x16xf32>
    %127 = arith.subf %123, %126 : vector<1x16x16xf32>
    %128 = math.exp %127 : vector<1x16x16xf32>
    %cst_54 = arith.constant dense<0.000000e+00> : vector<1x16xf32>
    %129 = vector.multi_reduction <add>, %128, %cst_54 [2] : vector<1x16x16xf32> to vector<1x16xf32>
    %130 = vector.shape_cast %129 : vector<1x16xf32> to vector<1x16x1xf32>
    %131 = tpu.reciprocal %130 {approx = true} : vector<1x16x1xf32> -> vector<1x16x1xf32>
    %132 = vector.broadcast %131 : vector<1x16x1xf32> to vector<1x16x16xf32>
    %133 = arith.mulf %128, %132 : vector<1x16x16xf32>
    %134 = arith.truncf %133 : vector<1x16x16xf32> to vector<1x16x16xbf16>
    %cst_55 = arith.constant dense<0.000000e+00> : vector<1x16x8xf32>
    %135 = tpu.matmul %134, %116, %cst_55 {dimension_numbers = #tpu.dot_dimension_numbers<[2], [1], [1], [2], [0, 0, 0, 1, 1, 2], [0], [0]>} : vector<1x16x16xbf16>, vector<1x16x8xbf16>, vector<1x16x8xf32> -> vector<1x16x8xf32>
    %136 = tpu.concatenate %70, %135 in 2 : vector<1x16x8xf32>, vector<1x16x8xf32> -> vector<1x16x16xf32>
    %c0_56 = arith.constant 0 : index
    %c0_57 = arith.constant 0 : index
    %c0_58 = arith.constant 0 : index
    %137 = vector.load %arg7[%c0_56, %c0_57, %c0_58] : memref<1x16x16xf32, #tpu.memory_space<vmem>>, vector<1x16x16xf32>
    tpu.vector_store %arg7[%c0_56, %c0_57, %c0_58], %136 {strides = array<i32>} : memref<1x16x16xf32, #tpu.memory_space<vmem>>, vector<1x16x16xf32>,
    return
  }
  func.func @transform_0(%arg0: i32) -> (i32, i32, i32) {
    %c0_i32 = arith.constant 0 : i32
    %c0_i32_0 = arith.constant 0 : i32
    %c0_i32_1 = arith.constant 0 : i32
    return %arg0, %c0_i32, %c0_i32_0 : i32, i32, i32
  }
  func.func @transform_1(%arg0: i32) -> (i32, i32, i32) {
    %c0_i32 = arith.constant 0 : i32
    %c0_i32_0 = arith.constant 0 : i32
    %c0_i32_1 = arith.constant 0 : i32
    %c0_i32_2 = arith.constant 0 : i32
    return %c0_i32, %c0_i32_0, %c0_i32_1 : i32, i32, i32
  }
  func.func @transform_2(%arg0: i32) -> (i32, i32, i32) {
    %c0_i32 = arith.constant 0 : i32
    %c0_i32_0 = arith.constant 0 : i32
    %c0_i32_1 = arith.constant 0 : i32
    %c0_i32_2 = arith.constant 0 : i32
    return %c0_i32, %c0_i32_0, %c0_i32_1 : i32, i32, i32
  }
  func.func @transform_3(%arg0: i32) -> (i32, i32, i32) {
    %c0_i32 = arith.constant 0 : i32
    %c0_i32_0 = arith.constant 0 : i32
    %c0_i32_1 = arith.constant 0 : i32
    %c0_i32_2 = arith.constant 0 : i32
    return %c0_i32, %c0_i32_0, %c0_i32_1 : i32, i32, i32
  }
  func.func @transform_4(%arg0: i32) -> (i32, i32, i32) {
    %c0_i32 = arith.constant 0 : i32
    %c0_i32_0 = arith.constant 0 : i32
    %c0_i32_1 = arith.constant 0 : i32
    %c0_i32_2 = arith.constant 0 : i32
    return %c0_i32, %c0_i32_0, %c0_i32_1 : i32, i32, i32
  }
  func.func @transform_5(%arg0: i32) -> (i32, i32) {
    %c0_i32 = arith.constant 0 : i32
    %c0_i32_0 = arith.constant 0 : i32
    %c0_i32_1 = arith.constant 0 : i32
    return %c0_i32, %c0_i32_0 : i32, i32
  }
  func.func @transform_6(%arg0: i32) -> (i32, i32, i32) {
    %c0_i32 = arith.constant 0 : i32
    %c0_i32_0 = arith.constant 0 : i32
    %c0_i32_1 = arith.constant 0 : i32
    return %arg0, %c0_i32, %c0_i32_0 : i32, i32, i32
  }
}

</mosaic_0001>

<bundles_post_ra>
// kernel: multi_head_gat.1
= control target key start
LH: loop header
LB: loop body
LE: loop exit
PB: predicated region body
PF: predicated region fallthrough
CT: control target
= control target key end

     0   :  { %11 = vsyncpa [#allocation3], 0  ;;  %s1461_s0 = inlined_call_operand.vmem [shape: f32[2,16,16], index: 0, kind: input, shape index: {}]   ;;  %s1462_s1 = inlined_call_operand.vmem [shape: bf16[2,16,32], index: 1, kind: input, shape index: {}]   ;;  %s1463_s2 = inlined_call_operand.vmem [shape: f32[2,3,32], index: 2, kind: input, shape index: {}]   ;;  %s1464_s3 = inlined_call_operand.vmem [shape: bf16[2,32,8], index: 3, kind: input, shape index: {}]   ;;  %s1465_s4 = inlined_call_operand.vmem [shape: f32[2,1,8], index: 4, kind: input, shape index: {}]   ;;  %s1466_s5 = inlined_call_operand.vmem [shape: bf16[16,16], index: 5, kind: input, shape index: {}]   ;;  %s1467_s6 = inlined_call_operand.hbm [shape: f32[2,16,16], index: 6, kind: output, shape index: {}]  }
   0x1   :  { %13 = vsyncpa [#allocation3 + $0x1], 0  ;;  %s1222_s21 = smov 0   ;;  %s1224_s22 = smov 0  }
   0x2   :  { %s1226_s23 = smov 0   ;;  %s1228_s24 = smov 0  }
   0x3 LB: > { %s1243_s25 = sadd.s32 4294967295, %s1180_s24   ;;  %s933_s26 = sadd.s32 4294967294, %s1180_s24   ;;  %s1180_s24 = sphi %s1228_s24, %s1473_s24   ;;  %s1176_s23 = sphi %s1226_s23, %s1472_s23   ;;  %s1172_s22 = sphi %s1224_s22, %s1471_s22   ;;  %s1168_s21 = sphi %s1222_s21, %s1470_s21  }
   0x4   : > { %s1247_s27 = sadd.s32 1, %s1180_s24   ;;  %s157_s28 = sadd.s32 1, %s1176_s23 }
   0x5   : > { %s154_s29 = ssub.s32 %s1180_s24, %s1247_s27  ;;  %p167_p0 = scmp.ne.s32.totalorder %s1176_s23, %s1172_s22 }
   0x6   : > { %p155_p1 = scmp.eq.s32.totalorder %s154_s29, 0  ;;  %p168_p2 = scmp.eq.s32.totalorder %s1243_s25, 1 }
   0x7   : > { %p173_p3 = scmp.ne.s32.totalorder %s1172_s22, %s1168_s21  ;;  %p174_p4 = scmp.eq.s32.totalorder %s933_s26, 1 }
   0x8   : > { %s1258_s30 = scalar_select %p155_p1, %s1176_s23, %s157_s28  }
   0x9   : > { %p1260_p5 = por %p168_p2, %p167_p0  ;;  %p1264_p6 = por %p174_p4, %p173_p3 }
   0xa   : > { %p936_p7 = scmp.ge.s32.totalorder %s1180_s24, 1  ;;  %p215_p8 = scmp.lt.s32.totalorder %s1180_s24, 3 }
   0xc   : > { %p216_p9 = pnand %p936_p7, %p215_p8 }
   0xd   : > { %v1088_v0 = vld [vmem:[%s1462_s1] sm:$0xff] (!%p216_p9)   ;;  %v1182_v1 = vmov (!%p216_p9), 0.0   ;;  %p245_p10 = scmp.lt.s32.totalorder (!%p216_p9), %s1243_s25, 1  ;;  %vm1183_vm0 = vmmov (!%p216_p9), 0   ;;  %vm271_vm1 = vcmask (!%p216_p9), 130048   ;;  %v261_v5 = vlaneseq (!%p216_p9)  ;;  %v1090_v23 = vld [vmem:[%s1464_s3 + $0x8] sm:$0xff] (!%p216_p9)  }
   0xe   : > { %219 = sbr.rel (%p216_p9) target bundleno = 2295 (0x8f7), region = 44  ;;  %993 = vmatprep.subr.bf16.mxu0 (!%p216_p9), %v1182_v1  ;;  %999 = vmatprep.subr.bf16.mxu1 (!%p216_p9), %v1182_v1  ;;  %v258_v8 = vld [vmem:[%s1463_s2] sm:$0x7] (!%p216_p9)  ;;  %vm316_vm2 = vcmask (!%p216_p9), 261120   ;;  %vm433_vm3 = vcmask (!%p216_p9), 64512   ;;  %s1184_s26 = smov (!%p216_p9), 8  }
   0xf   : > { %994 = vmatpush3.bf16.msra.mxu0 (!%p216_p9), %v1088_v0  ;;  %995 = vmatprep.mubr.msk.bf16.mxu0 (!%p216_p9), %vm1183_vm0, %v1182_v1  ;;  %v1291_v6 = vshrl.u32 (!%p216_p9), %v261_v5, 7  ;;  %v1089_v22 = vld [vmem:[%s1464_s3] sm:$0xff] (!%p216_p9)   ;;  %s242_s28 = sand.u32 (!%p216_p9), 1, %s1172_s22   ;;  %s1185_s16 = smov (!%p216_p9), [#allocation2]  }
  0x10   : > { %1003 = vmatprep.mubr.msk.bf16.mxu1 (!%p216_p9), %vm1183_vm0, %v1182_v1  ;;  %1007 = vmatprep.subr.bf16.mxu0 (!%p216_p9), %v1182_v1  ;;  %v942_v57 = vld [vmem:[%s1465_s4] ss:$0 sm:$0xff] (!%p216_p9)  ;;  %s937_s29 = sshll.u32 (!%p216_p9), %s242_s28, 4  ;;  %s1122_s17 = sshll.u32 (!%p216_p9), %s1185_s16, 4  ;;  %s1123_s17 = int_to_ptr.vmem [resolvable:$false] %s1122_s17 }
  0x11   : > { %v263_v7 = vsub.s32 (!%p216_p9), 0, %v1291_v6  ;;  %1000 = vmatpush3.bf16.msra.mxu1 (!%p216_p9), %v1089_v22  ;;  %v352_v40 = vsub.s32 (!%p216_p9), 1, %v1291_v6  ;;  %v358_v42 = vsub.s32 (!%p216_p9), 2, %v1291_v6  ;;  %v1340_v5 = vld [vmem:[%s1466_s5] sm:$0xff] (!%p216_p9)   ;;  %s244_s9 = scalar_lea.vmem (!%p216_p9), [#allocation2], %s937_s29  ;;  %s1124_s18 = scalar_lea.vmem (!%p216_p9), %s1123_s17, 512 }
  0x12   : > { %1001 = vmatprep.subr.bf16.mxu1 (!%p216_p9), %v1182_v1  ;;  %s871_s10 = sshll.u32 (!%p216_p9), %s244_s9, 4  ;;  %s1408_s10 = int_to_ptr.vmem [resolvable:$true] %s871_s10 }
  0x13   : > { %v264_v9 = vrot.slane (!%p216_p9), %v258_v8, %v263_v7  ;;  %v353_v41 = vrot.slane (!%p216_p9), %v258_v8, %v352_v40  ;;  %v359_v46 = vrot.slane (!%p216_p9), %v258_v8, %v358_v42  ;;  %p1125_p0 = scmp.lt.s32.totalorder (!%p216_p9), %s1408_s10, %s1123_s17 }
  0x15   : > { %s246_s11 = scalar_select %p245_p10, %s1243_s25, 1  ;;  %1002 = vmatpush3.bf16.msra.mxu1 %v1090_v23 }
  0x16   : > { %1013 = vmatprep.subr.bf16.mxu1 %v1182_v1 }
  0x17   : > { %s969_s12 = sshll.u32 %s246_s11, 4  ;;  %s970_s11 = sshll.u32 %s1243_s25, 8 }
  0x18   : > { %s249_s15 = scalar_lea.vmem %s1461_s0, %s969_s12  ;;  %s1414_s14 = scalar_lea.hbm %s1467_s6, %s970_s11 }
  0x19   : > { %v251_v2 = vld [vmem:[%s249_s15] sm:$0xff]  ;;  %v252_v3 = vld [vmem:[%s249_s15 + $0x8] sm:$0xff]  ;;  %s1419_s25 = scalar_lea.sflag [#allocation3], %s242_s28  ;;  %s1118_s15 = scalar_lea.vmem %s1408_s10, 256 }
  0x1a   : > { %v1285_v4 = vpack.c.bf16 %v252_v3, %v251_v2  ;;  %v1091_v3 = vld [vmem:[%s1462_s1 + $0x8] sm:$0xff]   ;;  %p1119_p11 = scmp.ne.s32.totalorder %s1408_s10, %s1118_s15  ;;  %p1126_p1 = scmp.lt.s32.totalorder %s1124_s18, %s1118_s15 }
  0x1c   : > { %996 = vmatmul.mubr.msk.bf16.vlgmr.msra.gmra.mrb[0].mxu0 %vm271_vm1, %v1285_v4  ;;  %p1120_p12 = pnand %p1119_p11, %p1260_p5  ;;  %p1127_p2 = por %p1126_p1, %p1125_p0 }
  0x1d   : > { %1009 = vmatprep.mubr.msk.bf16.mxu0 %vm1183_vm0, %v1182_v1 }
  0x1e   : > { %p1121_p13 = pneg %p1120_p12 }
  0x20   : > { %p1128_p3 = pnand %p1127_p2, %p1121_p13 }
  0xef   : > { %v309_v10 = vpop.f32.mrb[0].mxu0 }
  0xf0   : > { %v310_v11 = vadd.f32 %v309_v10, %v264_v9  ;;  %v997_v12 = vpop.f32.mrb[1].mxu0 }
  0xf1   : > { %v312_v13 = vpop.f32.mrb[2].mxu0 }
  0xf2   : > { %v313_v14 = vadd.f32 %v312_v13, %v264_v9  ;;  %v998_v15 = vpop.f32.mrb[3].mxu0  ;;  %v317_v16 = vsel %vm316_vm2, %v310_v11, 0.0  ;;  %v326_v17 = vmul.f32 %v310_v11, %v310_v11  ;;  %v973_v9 = vunpack.c.l.bf16 %v1340_v5  ;;  %v1346_v13 = vld [vmem:[%s1463_s2 + $0x4] sm:$0x7] }
  0xf3   : > { %318 = vadd.xlane.f32.xlu0 %v317_v16 }
  0xf4   : > { %v328_v18 = vsel %vm316_vm2, %v326_v17, 0.0  ;;  %v327_v19 = vmul.f32 %v313_v14, %v313_v14  ;;  %v320_v20 = vsel %vm316_vm2, %v313_v14, 0.0 }
  0xf5   : > { %329 = vadd.xlane.f32.xlu1 %v328_v18  ;;  %v561_v18 = vrot.slane %v1346_v13, %v263_v7 }
  0xf6   : > { %v331_v21 = vsel %vm316_vm2, %v327_v19, 0.0 }
  0xf7   : > { %321 = vadd.xlane.f32.xlu0 %v320_v20 }
  0xf9   : > { %332 = vadd.xlane.f32.xlu1 %v331_v21 }
 0x180   : > { %v319_v24 = vpop.xlane.xlu0 %318 }
 0x181   : > { %v324_v25 = vmul.f32 0.03125, %v319_v24 }
 0x182   : > { %v330_v26 = vpop.xlane.xlu1 %329 }
 0x183   : > { %v336_v27 = vmul.f32 %v324_v25, %v324_v25  ;;  %v334_v28 = vmul.f32 0.03125, %v330_v26  ;;  %v342_v43 = vsub.f32 %v310_v11, %v324_v25 }
 0x184   : > { %v322_v29 = vpop.xlane.xlu0 %321 }
 0x185   : > { %v338_v30 = vsub.f32 %v334_v28, %v336_v27  ;;  %v325_v31 = vmul.f32 0.03125, %v322_v29 }
 0x186   : > { %v333_v32 = vpop.xlane.xlu1 %332 }
 0x187   : > { %v340_v33 = vmax.f32 %v338_v30, 0.0  ;;  %v337_v34 = vmul.f32 %v325_v31, %v325_v31  ;;  %v335_v35 = vmul.f32 0.03125, %v333_v32  ;;  %v343_v47 = vsub.f32 %v313_v14, %v325_v31 }
 0x189   : > { %v344_v36 = vadd.f32 1e-05, %v340_v33  ;;  %v339_v37 = vsub.f32 %v335_v35, %v337_v34 }
 0x18b   : > { %1094 = vrsqrt.f32 %v344_v36  ;;  %v341_v38 = vmax.f32 %v339_v37, 0.0 }
 0x18d   : > { %v345_v39 = vadd.f32 1e-05, %v341_v38 }
 0x18f   : > { %1096 = vrsqrt.f32 %v345_v39 }
 0x195   : > { %v1095_v44 = vpop.eup %1094 }
 0x196   : > { %v348_v45 = vmul.f32 %v1095_v44, %v342_v43 }
 0x198   : > { %v354_v48 = vmul.f32 %v353_v41, %v348_v45 }
 0x199   : > { %v1097_v49 = vpop.eup %1096 }
 0x19a   : > { %v349_v50 = vmul.f32 %v1097_v49, %v343_v47  ;;  %v360_v52 = vadd.f32 %v359_v46, %v354_v48 }
 0x19c   : > { %v355_v51 = vmul.f32 %v353_v41, %v349_v50  ;;  %v362_v54 = vmax.f32 %v360_v52, 0.0 }
 0x19e   : > { %v361_v53 = vadd.f32 %v359_v46, %v355_v51 }
 0x1a0   : > { %v363_v55 = vmax.f32 %v361_v53, 0.0 }
 0x1a2   : > { %v364_v56 = vpack.c.bf16 %v363_v55, %v362_v54 }
 0x1a4   : > { %1004 = vmatmul.mubr.msk.bf16.vlgmr.msra.gmra.mrb[0].mxu1 %vm316_vm2, %v364_v56 }
 0x1a5   : > { %1015 = vmatprep.mubr.msk.bf16.mxu1 %vm1183_vm0, %v1182_v1 }
 0x277   : > { %v425_v58 = vpop.f32.mrb[0].mxu1 }
 0x278   : > { %v1005_v59 = vpop.f32.mrb[1].mxu1  ;;  %v426_v61 = vadd.f32 %v942_v57, %v425_v58 }
 0x279   : > { %v428_v60 = vpop.f32.mrb[2].mxu1 }
 0x27a   : > { %v429_v62 = vadd.f32 %v942_v57, %v428_v60  ;;  %v1006_v63 = vpop.f32.mrb[3].mxu1 }
 0x27c   : > { %v432_v0 = vpack.c.bf16 %v429_v62, %v426_v61 }
 0x27e   : > { %1014 = vmatpush3.bf16.msra.mxu1 %v432_v0  ;;  %v435_v2 = vsel %vm433_vm3, %v432_v0, 0 }
 0x27f   : > { %1008 = vmatpush3.bf16.xpose.msra.mxu0 %v435_v2  ;;  %1025 = vmatprep.subr.bf16.mxu1 %v1182_v1 }
 0x280   : > { %1019 = vmatprep.subr.bf16.mxu0 %v1182_v1 }
 0x286   : > { %1010 = vmatmul.mubr.msk.bf16.vlgmr.msra.gmra.mrb[4].mxu0 %vm433_vm3, %v432_v0 }
 0x287   : > { %1020 = vmatpush3.bf16.msra.mxu0 %v1091_v3  ;;  %1021 = vmatprep.mubr.msk.bf16.mxu0 %vm1183_vm0, %v1182_v1 }
 0x288   : > { %1033 = vmatprep.subr.bf16.mxu0 %v1182_v1 }
 0x28e   : > { %1022 = vmatmul.mubr.msk.bf16.vlgmr.msra.gmra.mrb[8].mxu0 %vm271_vm1, %v1285_v4  ;;  %v974_v4 = vunpack.c.h.bf16 %v1340_v5 }
 0x28f   : > { %1035 = vmatprep.mubr.msk.bf16.mxu0 %vm1183_vm0, %v1182_v1 }
 0x359   : > { %v471_v8 = vpop.f32.mrb[4].mxu0 }
 0x35a   : > { %vm478_vm4 = vcmp.gt.f32.partialorder %v471_v8, 0.0  ;;  %v480_v10 = vmul.f32 0.1, %v471_v8  ;;  %v1011_v11 = vpop.f32.mrb[5].mxu0 }
 0x35b   : > { %v474_v12 = vpop.f32.mrb[6].mxu0  ;;  %v644_v11 = vrot.slane %v1346_v13, %v352_v40 }
 0x35c   : > { %vm479_vm5 = vcmp.gt.f32.partialorder %v474_v12, 0.0  ;;  %v481_v14 = vmul.f32 0.1, %v474_v12  ;;  %v1012_v15 = vpop.f32.mrb[7].mxu0  ;;  %v482_v16 = vsel %vm478_vm4, %v471_v8, %v480_v10 }
 0x35d   : > { %v484_v17 = vmul.f32 %v973_v9, %v482_v16 }
 0x35e   : > { %v483_v19 = vsel %vm479_vm5, %v474_v12, %v481_v14 }
 0x35f   : > { %v486_v20 = vsel %vm271_vm1, %v484_v17, -inf  ;;  %v485_v21 = vmul.f32 %v974_v4, %v483_v19 }
 0x360   : > { %487 = vmax.xlane.f32.xlu0 %v486_v20 }
 0x361   : > { %v602_v22 = vpop.f32.mrb[8].mxu0  ;;  %v489_v23 = vsel %vm271_vm1, %v485_v21, -inf }
 0x362   : > { %v603_v24 = vadd.f32 %v602_v22, %v561_v18  ;;  %490 = vmax.xlane.f32.xlu1 %v489_v23  ;;  %v1023_v25 = vpop.f32.mrb[9].mxu0 }
 0x363   : > { %v605_v26 = vpop.f32.mrb[10].mxu0 }
 0x364   : > { %v606_v27 = vadd.f32 %v605_v26, %v561_v18  ;;  %v609_v28 = vsel %vm316_vm2, %v603_v24, 0.0  ;;  %v617_v29 = vmul.f32 %v603_v24, %v603_v24  ;;  %v1024_v30 = vpop.f32.mrb[11].mxu0 }
 0x365   : > { %610 = vadd.xlane.f32.xlu0 %v609_v28 }
 0x366   : > { %v612_v7 = vsel %vm316_vm2, %v606_v27, 0.0  ;;  %v619_v31 = vsel %vm316_vm2, %v617_v29, 0.0  ;;  %v618_v32 = vmul.f32 %v606_v27, %v606_v27  ;;  %v958_v29 = vld [vmem:[%s1465_s4 + $0x1] ss:$0 sm:$0xff] }
 0x367   : > { %613 = vadd.xlane.f32.xlu1 %v612_v7 }
 0x368   : > { %v622_v33 = vsel %vm316_vm2, %v618_v32, 0.0 }
 0x369   : > { %620 = vadd.xlane.f32.xlu0 %v619_v31 }
 0x36b   : > { %623 = vadd.xlane.f32.xlu1 %v622_v33 }
 0x3ed   : > { %v488_v34 = vpop.xlane.xlu0 %487 }
 0x3ee   : > { %v492_v35 = vsub.f32 %v484_v17, %v488_v34  ;;  %v650_v17 = vrot.slane %v1346_v13, %v358_v42 }
 0x3ef   : > { %v491_v36 = vpop.xlane.xlu1 %490 }
 0x3f0   : > { %v494_v37 = vmul.f32 1.442695, %v492_v35  ;;  %v493_v38 = vsub.f32 %v485_v21, %v491_v36  ;;  %v1092_v21 = vld [vmem:[%s1464_s3 + $0x10] sm:$0xff]  }
 0x3f2   : > { %1098 = vpow2.f32 %v494_v37  ;;  %v496_v39 = vmul.f32 1.442695, %v493_v38  ;;  %v611_v47 = vpop.xlane.xlu0 %610 }
 0x3f3   : > { %v615_v51 = vmul.f32 0.03125, %v611_v47 }
 0x3f4   : > { %1100 = vpow2.f32 %v496_v39  ;;  %v614_v46 = vpop.xlane.xlu1 %613 }
 0x3f5   : > { %v616_v49 = vmul.f32 0.03125, %v614_v46  ;;  %v627_v54 = vmul.f32 %v615_v51, %v615_v51  ;;  %v633_v8 = vsub.f32 %v603_v24, %v615_v51  ;;  %v1093_v24 = vld [vmem:[%s1464_s3 + $0x18] sm:$0xff]  }
 0x3f6   : > { %v621_v50 = vpop.xlane.xlu0 %620 }
 0x3f7   : > { %v628_v52 = vmul.f32 %v616_v49, %v616_v49  ;;  %v625_v55 = vmul.f32 0.03125, %v621_v50  ;;  %v634_v2 = vsub.f32 %v606_v27, %v616_v49 }
 0x3f8   : > { %v624_v48 = vpop.xlane.xlu1 %623 }
 0x3f9   : > { %v626_v53 = vmul.f32 0.03125, %v624_v48  ;;  %v629_v57 = vsub.f32 %v625_v55, %v627_v54 }
 0x3fb   : > { %v630_v56 = vsub.f32 %v626_v53, %v628_v52  ;;  %v631_v59 = vmax.f32 %v629_v57, 0.0 }
 0x3fc   : > { %v1099_v41 = vpop.eup %1098 }
 0x3fd   : > { %v498_v43 = vsel %vm271_vm1, %v1099_v41, 0.0  ;;  %v632_v58 = vmax.f32 %v630_v56, 0.0  ;;  %v635_v61 = vadd.f32 1e-05, %v631_v59 }
 0x3fe   : > { %v1101_v44 = vpop.eup %1100  ;;  %499 = vadd.xlane.f32.xlu0 %v498_v43 }
 0x3ff   : > { %v501_v45 = vsel %vm271_vm1, %v1101_v44, 0.0  ;;  %v636_v60 = vadd.f32 1e-05, %v632_v58 }
 0x400   : > { %502 = vadd.xlane.f32.xlu1 %v501_v45 }
 0x401   : > { %1102 = vrsqrt.f32 %v636_v60 }
 0x402   : > { %1104 = vrsqrt.f32 %v635_v61 }
 0x40b   : > { %v1103_v0 = vpop.eup %1102 }
 0x40c   : > { %v1105_v3 = vpop.eup %1104  ;;  %v640_v10 = vmul.f32 %v1103_v0, %v634_v2 }
 0x40d   : > { %v639_v12 = vmul.f32 %v1105_v3, %v633_v8 }
 0x40e   : > { %v646_v15 = vmul.f32 %v644_v11, %v640_v10 }
 0x40f   : > { %v645_v20 = vmul.f32 %v644_v11, %v639_v12 }
 0x410   : > { %v652_v23 = vadd.f32 %v650_v17, %v646_v15 }
 0x411   : > { %v651_v40 = vadd.f32 %v650_v17, %v645_v20 }
 0x412   : > { %v654_v6 = vmax.f32 %v652_v23, 0.0 }
 0x413   : > { %v653_v42 = vmax.f32 %v651_v40, 0.0 }
 0x415   : > { %v655_v13 = vpack.c.bf16 %v654_v6, %v653_v42 }
 0x48b   : > { %v500_v62 = vpop.xlane.xlu0 %499 }
 0x48c   : > { %1106 = vrcp.f32 %v500_v62 }
 0x48d   : > { %v503_v63 = vpop.xlane.xlu1 %502 }
 0x48e   : > { %1108 = vrcp.f32 %v503_v63 }
 0x496   : > { %v1107_v14 = vpop.eup %1106 }
 0x497   : > { %v506_v18 = vmul.f32 %v1107_v14, %v1099_v41 }
 0x498   : > { %v1109_v16 = vpop.eup %1108 }
 0x499   : > { %v507_v19 = vmul.f32 %v1109_v16, %v1101_v44 }
 0x49b   : > { %v508_v22 = vpack.c.bf16 %v507_v19, %v506_v18 }
 0x49d   : > { %1016 = vmatmul.mubr.msk.bf16.vlgmr.msra.gmra.mrb[4].mxu1 %vm271_vm1, %v508_v22 }
 0x49e   : > { %1026 = vmatpush3.bf16.msra.mxu1 %v1092_v21  ;;  %1029 = vmatprep.mubr.msk.bf16.mxu1 %vm1183_vm0, %v1182_v1 }
 0x49f   : > { %1027 = vmatprep.subr.bf16.mxu1 %v1182_v1 }
 0x4a2   : > { %1028 = vmatpush3.bf16.msra.mxu1 %v1093_v24 }
 0x4a3   : > { %1039 = vmatprep.subr.bf16.mxu1 %v1182_v1 }
 0x4a5   : > { %1030 = vmatmul.mubr.msk.bf16.vlgmr.msra.gmra.mrb[8].mxu1 %vm316_vm2, %v655_v13 }
 0x4a6   : > { %1041 = vmatprep.mubr.msk.bf16.mxu1 %vm1183_vm0, %v1182_v1 }
 0x570   : > { %v1384_v25 = vpop.f32.mrb[4].mxu1 }
 0x571   : > { %v1017_v26 = vpop.f32.mrb[5].mxu1 }
 0x572   : > { %v1386_v27 = vpop.f32.mrb[6].mxu1 }
 0x573   : > { %v1018_v28 = vpop.f32.mrb[7].mxu1 }
 0x578   : > { %v718_v30 = vpop.f32.mrb[8].mxu1 }
 0x579   : > { %v1031_v7 = vpop.f32.mrb[9].mxu1  ;;  %v719_v32 = vadd.f32 %v958_v29, %v718_v30 }
 0x57a   : > { %v721_v31 = vpop.f32.mrb[10].mxu1 }
 0x57b   : > { %v722_v33 = vadd.f32 %v958_v29, %v721_v31  ;;  %v1032_v34 = vpop.f32.mrb[11].mxu1 }
 0x57d   : > { %v725_v35 = vpack.c.bf16 %v722_v33, %v719_v32 }
 0x57f   : > { %1040 = vmatpush3.bf16.msra.mxu1 %v725_v35  ;;  %v727_v1 = vsel %vm433_vm3, %v725_v35, 0 }
 0x580   : > { %1034 = vmatpush3.bf16.xpose.msra.mxu0 %v727_v1 }
 0x587   : > { %1036 = vmatmul.mubr.msk.bf16.vlgmr.msra.gmra.mrb[12].mxu0 %vm433_vm3, %v725_v35 }
 0x65a   : > { %v763_v36 = vpop.f32.mrb[12].mxu0 }
 0x65b   : > { %vm770_vm6 = vcmp.gt.f32.partialorder %v763_v36, 0.0  ;;  %v772_v37 = vmul.f32 0.1, %v763_v36  ;;  %v1037_v38 = vpop.f32.mrb[13].mxu0 }
 0x65c   : > { %v766_v39 = vpop.f32.mrb[14].mxu0 }
 0x65d   : > { %vm771_vm7 = vcmp.gt.f32.partialorder %v766_v39, 0.0  ;;  %v773_v41 = vmul.f32 0.1, %v766_v39  ;;  %v1038_v43 = vpop.f32.mrb[15].mxu0  ;;  %v774_v44 = vsel %vm770_vm6, %v763_v36, %v772_v37 }
 0x65e   : > { %v776_v45 = vmul.f32 %v973_v9, %v774_v44 }
 0x65f   : > { %v775_v46 = vsel %vm771_vm7, %v766_v39, %v773_v41 }
 0x660   : > { %v778_v47 = vsel %vm271_vm1, %v776_v45, -inf  ;;  %v777_v48 = vmul.f32 %v974_v4, %v775_v46 }
 0x661   : > { %779 = vmax.xlane.f32.xlu0 %v778_v47 }
 0x662   : > { %v781_v49 = vsel %vm271_vm1, %v777_v48, -inf }
 0x663   : > { %782 = vmax.xlane.f32.xlu1 %v781_v49 }
 0x6ee   : > { %v780_v50 = vpop.xlane.xlu0 %779 }
 0x6ef   : > { %v784_v51 = vsub.f32 %v776_v45, %v780_v50 }
 0x6f0   : > { %v783_v52 = vpop.xlane.xlu1 %782 }
 0x6f1   : > { %v786_v53 = vmul.f32 1.442695, %v784_v51  ;;  %v785_v54 = vsub.f32 %v777_v48, %v783_v52 }
 0x6f3   : > { %1110 = vpow2.f32 %v786_v53  ;;  %v788_v55 = vmul.f32 1.442695, %v785_v54 }
 0x6f5   : > { %1112 = vpow2.f32 %v788_v55 }
 0x6fd   : > { %v1111_v56 = vpop.eup %1110 }
 0x6fe   : > { %v790_v9 = vsel %vm271_vm1, %v1111_v56, 0.0 }
 0x6ff   : > { %v1113_v57 = vpop.eup %1112  ;;  %791 = vadd.xlane.f32.xlu0 %v790_v9 }
 0x700   : > { %v793_v5 = vsel %vm271_vm1, %v1113_v57, 0.0 }
 0x701   : > { %794 = vadd.xlane.f32.xlu1 %v793_v5 }
 0x78c   : > { %v792_v4 = vpop.xlane.xlu0 %791 }
 0x78d   : > { %1114 = vrcp.f32 %v792_v4 }
 0x78e   : > { %v795_v58 = vpop.xlane.xlu1 %794 }
 0x78f   : > { %1116 = vrcp.f32 %v795_v58 }
 0x797   : > { %v1115_v59 = vpop.eup %1114 }
 0x798   : > { %v798_v61 = vmul.f32 %v1115_v59, %v1111_v56 }
 0x799   : > { %v1117_v60 = vpop.eup %1116 }
 0x79a   : > { %v799_v62 = vmul.f32 %v1117_v60, %v1113_v57 }
 0x79c   : > { %v800_v63 = vpack.c.bf16 %v799_v62, %v798_v61 }
 0x79e   : > { %1042 = vmatmul.mubr.msk.bf16.vlgmr.msra.gmra.mrb[12].mxu1 %vm271_vm1, %v800_v63 }
 0x871   : > { %v838_v0 = vpop.f32.mrb[12].mxu1 }
 0x872   : > { %847 = vrot.lane.b32.xlu0 %v838_v0, %s1184_s26  ;;  %v1043_v2 = vpop.f32.mrb[13].mxu1 }
 0x873   : > { %v841_v3 = vpop.f32.mrb[14].mxu1 }
 0x874   : > { %849 = vrot.lane.b32.xlu1 %v841_v3, %s1184_s26  ;;  %v1044_v8 = vpop.f32.mrb[15].mxu1 }
 0x8e4   : > { %v848_v10 = vpop.permute.xlu0 %847 }
 0x8e5   : > { %v853_v11 = vsel %vm433_vm3, %v1384_v25, %v848_v10 }
 0x8e6   : > { %855 = vst.msk [vmem:[%s244_s9] sm:$0xff] %vm271_vm1, %v853_v11  ;;  %v850_v12 = vpop.permute.xlu1 %849 }
 0x8e7   : > { %v854_v14 = vsel %vm433_vm3, %v1386_v27, %v850_v12 }
 0x8e8   : > { %856 = vst.msk [vmem:[%s244_s9 + $0x8] sm:$0xff] %vm271_vm1, %v854_v14 }
 0x8e9   : > { %1131 = shalt.err (!%p1128_p3)
}
 0x8ea   : > { %s1132_s19 = scalar_lea.hbm %s1414_s14, 256  ;;  %s1136_s29 = scalar_lea.hbm %s1467_s6, 512 }
 0x8eb   : > { %p1133_p4 = scmp.ne.s32.totalorder %s1414_s14, %s1132_s19  ;;  %p1137_p9 = scmp.lt.u32.totalorder %s1414_s14, %s1467_s6 }
 0x8ec   : > { %p1138_p10 = scmp.lt.u32.totalorder %s1136_s29, %s1132_s19  ;;  %p1140_p12 = scmp.lt.u32.totalorder %s1132_s19, %s1414_s14 }
 0x8ed   : > { %p1134_p7 = pnand %p1133_p4, %p1260_p5 }
 0x8ee   : > { %p1139_p11 = por %p1138_p10, %p1137_p9 }
 0x8ef   : > { %p1135_p8 = pneg %p1134_p7 }
 0x8f0   : > { %p1141_p13 = por %p1140_p12, %p1139_p11 }
 0x8f2   : > { %p1142_p0 = pnand %p1141_p13, %p1135_p8 }
 0x8f4   : > { %1145 = shalt.err (!%p1142_p0)
}
 0x8f5   : > { %s1186_s12 = smov 128  }
 0x8f6   : > { %1045 = dma.vmem_to_hbm [thread:$0]  (%p1260_p5), %s1408_s10, 256, %s1414_s14, %s1419_s25, %s1186_s12, %s1186_s12, %s1184_s26  }
 0x8f7 PF: > { %p1051_p1 = scmp.ge.s32.totalorder %s1180_s24, 2  ;;  %s886_s13 = sand.u32 1, %s1168_s21  }
 0x8f8   : > { %s887_s15 = scalar_lea.sflag [#allocation3], %s886_s13 }
 0x8f9   : > { %p1048_p2 = pnand %p1051_p1, %p1264_p6 }
 0x8fb   : > { %1163 = dma.done.wait (!%p1048_p2), %s887_s15, 256  }
 0x8fc   : > { %1165 = vsyncadd (!%p1048_p2), %s887_s15, 4294967040  ;;  %p16_p3 = scmp.ge.s32.totalorder %s1247_s27, 4   ;;  %s1470_s21 = smov %s1172_s22 }
 0x8fd   : > { %s1471_s22 = smov %s1176_s23  ;;  %s1472_s23 = smov %s1258_s30 }
 0x8fe   : > { %s1473_s24 = smov %s1247_s27  ;;  %18 = sbr.rel (!%p16_p3) target bundleno = 3 (0x3), region = 83 }
 0x905   :  { %892 = vsyncpa [#allocation3], 1 }
 0x906   :  { %894 = vsyncpa [#allocation3 + $0x1], 1 }

</bundles_post_ra>
